<compile_context>
chip_gen: v5e
topology: v5e:2x2
jax: 0.10.0
libtpu: 0.0.40
codegen_flags: <defaults>
</compile_context>

<pallas_src>
import functools
import math

import jax
import jax.numpy as jnp
from jax.experimental import pallas as pl
from jax.experimental.pallas import tpu as pltpu

LANE = 128
SUBLANE = 8
MAX_BATCH_TILE = 1024          # bf16 operands -> big tiles amortize ~0.35us/step overhead
SPLIT_BATCH_THRESHOLD = 256    # force >=2 grid steps above this so both v7x TCs get work


def _round_up(x: int, m: int) -> int:
    return ((x + m - 1) // m) * m


def _cdiv(a: int, b: int) -> int:
    return (a + b - 1) // b


def _fused_mlp_kernel(*refs, n_layers: int):
    """refs = (x, w0, b0, w1, b1, ..., o).  Whole MLP on one (TB, D) activation tile."""
    x_ref = refs[0]
    o_ref = refs[-1]
    # bf16 MXU operands, f32 accumulation; bias add + ReLU on the f32 accumulator.
    x = x_ref[...].astype(jnp.bfloat16)
    for i in range(n_layers):
        w = refs[1 + 2 * i][...]            # bf16 (D_in, D_out_p)
        b = refs[2 + 2 * i][...]            # f32  (1, D_out_p): broadcasts over batch sublanes
        y = jnp.dot(x, w, preferred_element_type=jnp.float32) + b
        if i < n_layers - 1:
            x = jnp.maximum(y, 0.0).astype(jnp.bfloat16)   # ReLU in f32, re-pack to bf16
        else:
            x = y
    o_ref[...] = x.astype(o_ref.dtype)


def _fused_mlp_forward(padded_params, state, *, action_dim: int):
    """padded_params: list of (w_p bf16 (Din, Dout_p), b_p f32 (1, Dout_p)), lane-padded on the
       output dim (first layer keeps its real K).  state: (B, state_dim) float.  Returns
       (B, action_dim) f32."""
    n_layers = len(padded_params)
    B, d_in = state.shape
    d_out_p = padded_params[-1][0].shape[1]

    x = state.astype(jnp.float32)           # state.float()

    # --- batch tiling: balanced tiles, >=2 steps for mid/large batches (v7x megacore) ---
    Bp = _round_up(max(B, 1), SUBLANE)
    num_tiles = _cdiv(Bp, MAX_BATCH_TILE)
    if Bp >= SPLIT_BATCH_THRESHOLD:
        num_tiles = max(num_tiles, 2)
    tb = _round_up(_cdiv(Bp, num_tiles), SUBLANE)
    Bp = _round_up(Bp, tb)
    grid = (Bp // tb,)

    if Bp != B:
        # Only the batch dim is padded (at most tb-1 rows); the feature dim is fed unpadded.
        x = jnp.pad(x, ((0, Bp - B), (0, 0)))

    # --- specs: activation tiled over the batch grid, weights/biases resident (block (0,0)) ---
    in_specs = [pl.BlockSpec((tb, d_in), lambda i: (i, 0))]
    flat_inputs = [x]
    for (w_p, b_p) in padded_params:
        in_specs.append(pl.BlockSpec(w_p.shape, lambda i: (0, 0)))
        in_specs.append(pl.BlockSpec(b_p.shape, lambda i: (0, 0)))
        flat_inputs.append(w_p)
        flat_inputs.append(b_p)

    # --- VMEM budget guard (resident weights + double-buffered activation tiles) ---
    weight_bytes = sum(int(w.size) * w.dtype.itemsize + int(b.size) * b.dtype.itemsize
                       for (w, b) in padded_params)
    max_d = max(int(w.shape[1]) for (w, _) in padded_params)
    act_bytes = 2 * tb * (d_in * 4 + d_out_p * 4)       # double-buffered in/out tiles
    act_bytes += tb * max_d * (4 + 2)                   # live f32 + bf16 intermediates
    vmem_limit = min(max(2 * weight_bytes + act_bytes + (8 << 20), 32 << 20), 64 << 20)
    # TODO(synk): fall back to a K/N-tiled inner pipeline (pltpu.emit_pipeline) if the resident
    # weight footprint ever exceeds ~24 MiB (v7x only has 64 MiB VMEM per TensorCore).

    kernel = functools.partial(_fused_mlp_kernel, n_layers=n_layers)
    out_pad = pl.pallas_call(
        kernel,
        out_shape=jax.ShapeDtypeStruct((Bp, d_out_p), jnp.float32),
        grid=grid,
        in_specs=in_specs,
        out_specs=pl.BlockSpec((tb, d_out_p), lambda i: (i, 0)),
        compiler_params=pltpu.CompilerParams(
            dimension_semantics=("parallel",),          # shards batch tiles across TCs on v7x
            vmem_limit_bytes=vmem_limit),
    )(*flat_inputs)
    # Lane-dense store inside the kernel; the narrow (B, action_dim) view is sliced here.
    # (Fusing the consumer, e.g. a softmax/argmax over actions, into the kernel would remove it.)
    return out_pad[:B, :action_dim]


class PolicyNetworkPallas:
    """JAX/Pallas port of the PyTorch PolicyNetwork MLP (fused single-kernel forward)."""

    def __init__(self, state_dim: int, action_dim: int, hidden_dim: int,
                 hidden_layers: int, key: jax.Array):
        self.state_dim = state_dim
        self.action_dim = action_dim
        self.dims = [state_dim] + [hidden_dim] * hidden_layers + [action_dim]

        self.params = []          # unpadded f32, for reference checks
        self.padded_params = []   # lane-padded: bf16 weights, f32 biases (kernel operands)
        # Deterministic init mimicking nn.Linear default: U(-1/sqrt(fan_in), 1/sqrt(fan_in))
        for i in range(len(self.dims) - 1):
            fan_in, fan_out = self.dims[i], self.dims[i + 1]
            key, kw, kb = jax.random.split(key, 3)
            bound = 1.0 / math.sqrt(fan_in)
            w = jax.random.uniform(kw, (fan_in, fan_out), jnp.float32, -bound, bound)
            b = jax.random.uniform(kb, (fan_out,), jnp.float32, -bound, bound)
            self.params.append((w, b))

            # First layer keeps its real K (input is fed unpadded); all output dims pad to 128.
            k_in = fan_in if i == 0 else _round_up(fan_in, LANE)
            k_out = _round_up(fan_out, LANE)
            w_p = jnp.zeros((k_in, k_out), jnp.float32).at[:fan_in, :fan_out].set(w)
            w_p = w_p.astype(jnp.bfloat16)                       # bf16 MXU operand, half the DMA
            b_p = jnp.zeros((1, k_out), jnp.float32).at[0, :fan_out].set(b)
            self.padded_params.append((w_p, b_p))

        self._forward = jax.jit(
            functools.partial(_fused_mlp_forward, action_dim=action_dim))

    def __call__(self, state: jax.Array) -> jax.Array:
        return self._forward(self.padded_params, state)


def reference_forward(params, state):
    x = state.astype(jnp.float32)
    n = len(params)
    for i, (w, b) in enumerate(params):
        x = x @ w + b
        if i < n - 1:
            x = jnp.maximum(x, 0.0)
    return x


if __name__ == "__main__":
    key = jax.random.PRNGKey(0)
    key, k_init, k_x = jax.random.split(key, 3)

    batch = 8
    state_dim = 16
    action_dim = 8
    hidden_dim = 32
    hidden_layers = 2

    net = PolicyNetworkPallas(state_dim, action_dim, hidden_dim, hidden_layers, k_init)
    state = jax.random.normal(k_x, (batch, state_dim), jnp.float32)

    out = jax.block_until_ready(net(state))

    ref = reference_forward(net.params, state)
    assert out.shape == (batch, action_dim), out.shape
    # bf16 MXU operands (f32 accumulation) -> relaxed tolerance vs the pure-f32 reference.
    assert jnp.allclose(out, ref, atol=5e-2, rtol=5e-2), "mismatch vs reference"

    print("KERNEL_OK")
</pallas_src>

<mosaic_0001>
module attributes {stable_mosaic.version = 11 : i64} {
  func.func @_fused_mlp_kernel(%arg0: i32, %arg1: memref<8x16xf32, #tpu.memory_space<vmem>>, %arg2: memref<16x128xbf16, #tpu.memory_space<vmem>>, %arg3: memref<1x128xf32, #tpu.memory_space<vmem>>, %arg4: memref<128x128xbf16, #tpu.memory_space<vmem>>, %arg5: memref<1x128xf32, #tpu.memory_space<vmem>>, %arg6: memref<128x128xbf16, #tpu.memory_space<vmem>>, %arg7: memref<1x128xf32, #tpu.memory_space<vmem>>, %arg8: memref<8x128xf32, #tpu.memory_space<vmem>>) attributes {dimension_semantics = [#tpu.dimension_semantics<parallel>], iteration_bounds = array<i64: 1>, scalar_prefetch = 0 : i64, scratch_operands = 0 : i64, tpu.core_type = #tpu.core_type<tc>, window_params = [{transform_indices = @transform_0, window_bounds = array<i64: 8, 16>}, {pipeline_mode = #tpu.pipeline_mode<synchronous>, transform_indices = @transform_1, window_bounds = array<i64: 16, 128>}, {pipeline_mode = #tpu.pipeline_mode<synchronous>, transform_indices = @transform_2, window_bounds = array<i64: 1, 128>}, {pipeline_mode = #tpu.pipeline_mode<synchronous>, transform_indices = @transform_3, window_bounds = array<i64: 128, 128>}, {pipeline_mode = #tpu.pipeline_mode<synchronous>, transform_indices = @transform_4, window_bounds = array<i64: 1, 128>}, {pipeline_mode = #tpu.pipeline_mode<synchronous>, transform_indices = @transform_5, window_bounds = array<i64: 128, 128>}, {pipeline_mode = #tpu.pipeline_mode<synchronous>, transform_indices = @transform_6, window_bounds = array<i64: 1, 128>}, {transform_indices = @transform_7, window_bounds = array<i64: 8, 128>}]} {
    %c0 = arith.constant 0 : index
    %c0_0 = arith.constant 0 : index
    %0 = vector.load %arg1[%c0, %c0_0] : memref<8x16xf32, #tpu.memory_space<vmem>>, vector<8x16xf32>
    %1 = arith.truncf %0 : vector<8x16xf32> to vector<8x16xbf16>
    %c0_1 = arith.constant 0 : index
    %c0_2 = arith.constant 0 : index
    %2 = vector.load %arg2[%c0_1, %c0_2] : memref<16x128xbf16, #tpu.memory_space<vmem>>, vector<16x128xbf16>
    %c0_3 = arith.constant 0 : index
    %c0_4 = arith.constant 0 : index
    %3 = vector.load %arg3[%c0_3, %c0_4] : memref<1x128xf32, #tpu.memory_space<vmem>>, vector<1x128xf32>
    %cst = arith.constant dense<0.000000e+00> : vector<8x128xf32>
    %4 = tpu.matmul %1, %2, %cst {dimension_numbers = #tpu.dot_dimension_numbers<[1], [0], [0], [1], [0, 0, 1, 1], [], []>} : vector<8x16xbf16>, vector<16x128xbf16>, vector<8x128xf32> -> vector<8x128xf32>
    %5 = vector.broadcast %3 : vector<1x128xf32> to vector<8x128xf32>
    %6 = arith.addf %4, %5 : vector<8x128xf32>
    %cst_5 = arith.constant 0.000000e+00 : f32
    %7 = vector.broadcast %cst_5 : f32 to vector<8x128xf32>
    %8 = arith.maximumf %6, %7 : vector<8x128xf32>
    %9 = arith.truncf %8 : vector<8x128xf32> to vector<8x128xbf16>
    %c0_6 = arith.constant 0 : index
    %c0_7 = arith.constant 0 : index
    %10 = vector.load %arg4[%c0_6, %c0_7] : memref<128x128xbf16, #tpu.memory_space<vmem>>, vector<128x128xbf16>
    %c0_8 = arith.constant 0 : index
    %c0_9 = arith.constant 0 : index
    %11 = vector.load %arg5[%c0_8, %c0_9] : memref<1x128xf32, #tpu.memory_space<vmem>>, vector<1x128xf32>
    %cst_10 = arith.constant dense<0.000000e+00> : vector<8x128xf32>
    %12 = tpu.matmul %9, %10, %cst_10 {dimension_numbers = #tpu.dot_dimension_numbers<[1], [0], [0], [1], [0, 0, 1, 1], [], []>} : vector<8x128xbf16>, vector<128x128xbf16>, vector<8x128xf32> -> vector<8x128xf32>
    %13 = vector.broadcast %11 : vector<1x128xf32> to vector<8x128xf32>
    %14 = arith.addf %12, %13 : vector<8x128xf32>
    %cst_11 = arith.constant 0.000000e+00 : f32
    %15 = vector.broadcast %cst_11 : f32 to vector<8x128xf32>
    %16 = arith.maximumf %14, %15 : vector<8x128xf32>
    %17 = arith.truncf %16 : vector<8x128xf32> to vector<8x128xbf16>
    %c0_12 = arith.constant 0 : index
    %c0_13 = arith.constant 0 : index
    %18 = vector.load %arg6[%c0_12, %c0_13] : memref<128x128xbf16, #tpu.memory_space<vmem>>, vector<128x128xbf16>
    %c0_14 = arith.constant 0 : index
    %c0_15 = arith.constant 0 : index
    %19 = vector.load %arg7[%c0_14, %c0_15] : memref<1x128xf32, #tpu.memory_space<vmem>>, vector<1x128xf32>
    %cst_16 = arith.constant dense<0.000000e+00> : vector<8x128xf32>
    %20 = tpu.matmul %17, %18, %cst_16 {dimension_numbers = #tpu.dot_dimension_numbers<[1], [0], [0], [1], [0, 0, 1, 1], [], []>} : vector<8x128xbf16>, vector<128x128xbf16>, vector<8x128xf32> -> vector<8x128xf32>
    %21 = vector.broadcast %19 : vector<1x128xf32> to vector<8x128xf32>
    %22 = arith.addf %20, %21 : vector<8x128xf32>
    %c0_17 = arith.constant 0 : index
    %c0_18 = arith.constant 0 : index
    %23 = vector.load %arg8[%c0_17, %c0_18] : memref<8x128xf32, #tpu.memory_space<vmem>>, vector<8x128xf32>
    tpu.vector_store %arg8[%c0_17, %c0_18], %22 {strides = array<i32>} : memref<8x128xf32, #tpu.memory_space<vmem>>, vector<8x128xf32>,
    return
  }
  func.func @transform_0(%arg0: i32) -> (i32, i32) {
    %c0_i32 = arith.constant 0 : i32
    %c0_i32_0 = arith.constant 0 : i32
    return %arg0, %c0_i32 : i32, i32
  }
  func.func @transform_1(%arg0: i32) -> (i32, i32) {
    %c0_i32 = arith.constant 0 : i32
    %c0_i32_0 = arith.constant 0 : i32
    %c0_i32_1 = arith.constant 0 : i32
    return %c0_i32, %c0_i32_0 : i32, i32
  }
  func.func @transform_2(%arg0: i32) -> (i32, i32) {
    %c0_i32 = arith.constant 0 : i32
    %c0_i32_0 = arith.constant 0 : i32
    %c0_i32_1 = arith.constant 0 : i32
    return %c0_i32, %c0_i32_0 : i32, i32
  }
  func.func @transform_3(%arg0: i32) -> (i32, i32) {
    %c0_i32 = arith.constant 0 : i32
    %c0_i32_0 = arith.constant 0 : i32
    %c0_i32_1 = arith.constant 0 : i32
    return %c0_i32, %c0_i32_0 : i32, i32
  }
  func.func @transform_4(%arg0: i32) -> (i32, i32) {
    %c0_i32 = arith.constant 0 : i32
    %c0_i32_0 = arith.constant 0 : i32
    %c0_i32_1 = arith.constant 0 : i32
    return %c0_i32, %c0_i32_0 : i32, i32
  }
  func.func @transform_5(%arg0: i32) -> (i32, i32) {
    %c0_i32 = arith.constant 0 : i32
    %c0_i32_0 = arith.constant 0 : i32
    %c0_i32_1 = arith.constant 0 : i32
    return %c0_i32, %c0_i32_0 : i32, i32
  }
  func.func @transform_6(%arg0: i32) -> (i32, i32) {
    %c0_i32 = arith.constant 0 : i32
    %c0_i32_0 = arith.constant 0 : i32
    %c0_i32_1 = arith.constant 0 : i32
    return %c0_i32, %c0_i32_0 : i32, i32
  }
  func.func @transform_7(%arg0: i32) -> (i32, i32) {
    %c0_i32 = arith.constant 0 : i32
    %c0_i32_0 = arith.constant 0 : i32
    return %arg0, %c0_i32 : i32, i32
  }
}

</mosaic_0001>

<bundles_post_ra>
// kernel: _fused_mlp_forward.1
= control target key start
LH: loop header
LB: loop body
LE: loop exit
PB: predicated region body
PF: predicated region fallthrough
CT: control target
= control target key end

     0   :  { %12 = vsyncpa [#allocation3], 0  ;;  %s640_s0 = inlined_call_operand.hbm [shape: f32[8,16], index: 0, kind: input, shape index: {}]   ;;  %s641_s1 = inlined_call_operand.hbm [shape: bf16[16,128], index: 1, kind: input, shape index: {}]   ;;  %s642_s2 = inlined_call_operand.hbm [shape: f32[1,128], index: 2, kind: input, shape index: {}]   ;;  %s643_s3 = inlined_call_operand.hbm [shape: bf16[128,128], index: 3, kind: input, shape index: {}]   ;;  %s644_s4 = inlined_call_operand.vmem [shape: f32[1,128], index: 4, kind: input, shape index: {}]   ;;  %s645_s5 = inlined_call_operand.hbm [shape: bf16[128,128], index: 5, kind: input, shape index: {}]   ;;  %s646_s6 = inlined_call_operand.vmem [shape: f32[1,128], index: 6, kind: input, shape index: {}]   ;;  %s647_s7 = inlined_call_operand.hbm [shape: f32[8,128], index: 7, kind: output, shape index: {}]  }
   0x1   :  { %13 = vsyncpa [#allocation6], 0 }
   0x2   :  { %14 = vsyncpa [#allocation9], 0  ;;  %s31_s26 = sshll.u32 %s641_s1, 4  ;;  %s32_s26 = int_to_ptr.hbm [resolvable:$true] %s31_s26 }
   0x3   :  { %15 = vsyncpa [#allocation4], 0  ;;  %s568_s27 = smov [#allocation5]   ;;  %s55_s8 = sshll.u32 %s643_s3, 4  ;;  %s56_s8 = int_to_ptr.hbm [resolvable:$true] %s55_s8 }
   0x4   :  { %s33_s28 = sshll.u32 %s568_s27, 4  ;;  %s569_s9 = smov 64   ;;  %s34_s28 = int_to_ptr.vmem [resolvable:$true] %s33_s28 }
   0x5   :  { %s570_s10 = smov 4   ;;  %s571_s11 = smov [#allocation8]  }
   0x6   :  { %39 = dma.hbm_to_vmem [thread:$0]  %s32_s26, 128, %s34_s28, [#allocation6], %s569_s9, %s569_s9, %s570_s10  }
   0x7   :  { %s57_s12 = sshll.u32 %s571_s11, 4  ;;  %s21_s15 = sshll.u32 %s640_s0, 4  ;;  %s58_s12 = int_to_ptr.vmem [resolvable:$true] %s57_s12  ;;  %s22_s15 = int_to_ptr.hbm [resolvable:$true] %s21_s15 }
   0x8   :  { %63 = dma.hbm_to_vmem [thread:$0]  %s56_s8, 1024, %s58_s12, [#allocation9], %s569_s9, %s569_s9, %s570_s10  }
   0x9   :  { %s45_s17 = sshll.u32 %s642_s2, 4  ;;  %s572_s18 = smov [#allocation2]   ;;  %s46_s17 = int_to_ptr.hbm [resolvable:$true] %s45_s17 }
   0xa   :  { %s23_s19 = sshll.u32 %s572_s18, 4  ;;  %s573_s3 = smov [#allocation7]   ;;  %s24_s19 = int_to_ptr.vmem [resolvable:$true] %s23_s19 }
   0xb   :  { %26 = dma.hbm_to_vmem [thread:$0]  %s22_s15, 128, %s24_s19, [#allocation3]  }
   0xc   :  { %s47_s20 = sshll.u32 %s573_s3, 4  ;;  %s70_s23 = sshll.u32 %s645_s5, 4  ;;  %s48_s20 = int_to_ptr.vmem [resolvable:$true] %s47_s20  ;;  %s71_s23 = int_to_ptr.hbm [resolvable:$true] %s70_s23 }
   0xd   :  { %50 = dma.hbm_to_vmem [thread:$0]  %s46_s17, 16, %s48_s20, [#allocation6]  }
   0xe   :  { %s574_s0 = smov [#allocation10]  }
   0xf   :  { %s72_s24 = sshll.u32 %s574_s0, 4  ;;  %s73_s24 = int_to_ptr.vmem [resolvable:$true] %s72_s24 }
  0x10   :  { %78 = dma.hbm_to_vmem [thread:$0]  %s71_s23, 1024, %s73_s24, [#allocation9], %s569_s9, %s569_s9, %s570_s10  }
  0x11   :  { %560 = dma.done.wait [#allocation3], 128  }
  0x12   :  { %561 = vsyncadd [#allocation3], 4294967168 }
  0x13   :  { %562 = dma.done.wait [#allocation6], 144  }
  0x14   :  { %563 = vsyncadd [#allocation6], 4294967152 }
  0x15   :  { %564 = dma.done.wait [#allocation9], 2048  }
  0x16   :  { %565 = vsyncadd [#allocation9], 4294965248  ;;  %v388_v0 = vld [vmem:[#allocation5] sm:$0xff]  ;;  %v102_v1 = vld [vmem:[#allocation2] sm:$0xff]  ;;  %vm116_vm0 = vcmask 130048   ;;  %s575_s27 = smov [#allocation11]  }
  0x17   :  { %v396_v2 = vld [vmem:[#allocation8 + $0x38] sm:$0xff]  ;;  %v103_v3 = vpack.c.bf16 %v102_v1, %v102_v1  ;;  %127 = vmatpush.bf16.msra.mxu0 %v388_v0  ;;  %v395_v4 = vld [vmem:[#allocation8 + $0x30] sm:$0xff]  ;;  %v394_v5 = vld [vmem:[#allocation8 + $0x28] sm:$0xff]  ;;  %s305_s28 = sshll.u32 %s575_s27, 4  ;;  %s307_s8 = sshll.u32 %s647_s7, 4  ;;  %s306_s28 = int_to_ptr.vmem [resolvable:$true] %s305_s28  ;;  %s308_s8 = int_to_ptr.hbm [resolvable:$true] %s307_s8 }
  0x18   :  { %203 = vmatpush.bf16.msra.mxu1 %v396_v2  ;;  %v393_v6 = vld [vmem:[#allocation8 + $0x20] sm:$0xff]  ;;  %v392_v7 = vld [vmem:[#allocation8 + $0x18] sm:$0xff]  ;;  %v391_v8 = vld [vmem:[#allocation8 + $0x10] sm:$0xff] }
  0x19   :  { %v390_v9 = vld [vmem:[#allocation8 + $0x8] sm:$0xff]  ;;  %v389_v10 = vld [vmem:[#allocation8] sm:$0xff]  ;;  %v404_v11 = vld [vmem:[#allocation10 + $0x38] sm:$0xff] }
  0x1a   :  { %323 = vmatmul.msk.bf16.vlgmr.msra.gmra.mxu0 %vm116_vm0, %v103_v3  ;;  %286 = vmatpush.bf16.msra.mxu2 %v404_v11  ;;  %v403_v12 = vld [vmem:[#allocation10 + $0x30] sm:$0xff]  ;;  %v402_v13 = vld [vmem:[#allocation10 + $0x28] sm:$0xff]  ;;  %v401_v14 = vld [vmem:[#allocation10 + $0x20] sm:$0xff] }
  0x1b   :  { %v400_v15 = vld [vmem:[#allocation10 + $0x18] sm:$0xff]  ;;  %v399_v16 = vld [vmem:[#allocation10 + $0x10] sm:$0xff]  ;;  %v398_v23 = vld [vmem:[#allocation10 + $0x8] sm:$0xff] }
  0x1c   :  { %204 = vmatpush.bf16.msra.mxu1 %v395_v4  ;;  %v413_v17 = vld [vmem:[#allocation7] ss:$0 sm:$0xff]  ;;  %v397_v24 = vld [vmem:[#allocation10] sm:$0xff]  ;;  %v414_v25 = vld [vmem:[%s644_s4] ss:$0 sm:$0xff] }
  0x1d   :  { %v415_v31 = vld [vmem:[%s646_s6] ss:$0 sm:$0xff] }
  0x1e   :  { %287 = vmatpush.bf16.msra.mxu2 %v403_v12 }
  0x20   :  { %205 = vmatpush.bf16.msra.mxu1 %v394_v5 }
  0x22   :  { %288 = vmatpush.bf16.msra.mxu2 %v402_v13 }
  0x24   :  { %206 = vmatpush.bf16.msra.mxu1 %v393_v6 }
  0x26   :  { %289 = vmatpush.bf16.msra.mxu2 %v401_v14 }
  0x28   :  { %207 = vmatpush.bf16.msra.mxu1 %v392_v7 }
  0x2a   :  { %290 = vmatpush.bf16.msra.mxu2 %v400_v15 }
  0x2c   :  { %208 = vmatpush.bf16.msra.mxu1 %v391_v8 }
  0x2e   :  { %291 = vmatpush.bf16.msra.mxu2 %v399_v16 }
  0x30   :  { %209 = vmatpush.bf16.msra.mxu1 %v390_v9 }
  0x32   :  { %292 = vmatpush.bf16.msra.mxu2 %v398_v23 }
  0x34   :  { %210 = vmatpush.bf16.msra.mxu1 %v389_v10 }
  0x36   :  { %293 = vmatpush.bf16.msra.mxu2 %v397_v24 }
  0x97   :  { %v129_v18 = vpop.f32.mrf.mxu0 }
  0x98   :  { %v130_v19 = vadd.f32 %v413_v17, %v129_v18 }
  0x9a   :  { %v133_v20 = vmax.f32 %v130_v19, 0.0 }
  0x9c   :  { %v134_v21 = vpack.c.bf16 %v133_v20, %v133_v20 }
  0x9e   :  { %211 = vmatmul.bf16.vlgmr.msra.gmra.mxu1 %v134_v21 }
  0x9f   :  { %v131_v22 = vpop.f32.mrf.mxu0 }
 0x11b   :  { %v212_v26 = vpop.f32.mrf.mxu1 }
 0x11c   :  { %v213_v27 = vadd.f32 %v414_v25, %v212_v26 }
 0x11e   :  { %v216_v28 = vmax.f32 %v213_v27, 0.0 }
 0x120   :  { %v217_v29 = vpack.c.bf16 %v216_v28, %v216_v28 }
 0x122   :  { %294 = vmatmul.bf16.vlgmr.msra.gmra.mxu2 %v217_v29 }
 0x123   :  { %v214_v30 = vpop.f32.mrf.mxu1 }
 0x1a5   :  { %v295_v32 = vpop.f32.mrf.mxu2 }
 0x1a6   :  { %v296_v33 = vadd.f32 %v415_v31, %v295_v32 }
 0x1a8   :  { %299 = vst [vmem:[#allocation11] sm:$0xff] %v296_v33 }
 0x1a9   :  { %310 = dma.vmem_to_hbm [thread:$0]  %s306_s28, 128, %s308_s8, [#allocation4]  }
 0x1ad   :  { %v297_v34 = vpop.f32.mrf.mxu2 }
 0x1ae   :  { %566 = dma.done.wait [#allocation4], 128  }
 0x1af   :  { %567 = vsyncadd [#allocation4], 4294967168 }
 0x1b0   :  { %315 = vsyncpa [#allocation3], 1 }
 0x1b1   :  { %316 = vsyncpa [#allocation6], 1 }
 0x1b2   :  { %317 = vsyncpa [#allocation9], 1 }
 0x1b3   :  { %318 = vsyncpa [#allocation4], 1 }

</bundles_post_ra>
